<compile_context>
chip_gen: v5e
topology: v5e:2x2
jax: 0.10.0
libtpu: 0.0.40
codegen_flags: <defaults>
</compile_context>

<pallas_src>
import functools

import jax
import jax.numpy as jnp
import numpy as np
from jax.experimental import pallas as pl
from jax.experimental.pallas import tpu as pltpu


def _round_up(x, m):
    return ((x + m - 1) // m) * m


def _weighted_sum_kernel(w_ref, *refs, n_inputs):
    # w_ref : (n_inputs,) f32 scalar-prefetch operand in SMEM
    # refs  : n_inputs input tiles in VMEM, then the output tile
    x_refs = refs[:n_inputs]
    o_ref = refs[n_inputs]
    acc = x_refs[0][...].astype(jnp.float32) * w_ref[0]
    for i in range(1, n_inputs):          # n_inputs is small & static -> unrolled
        acc = acc + x_refs[i][...].astype(jnp.float32) * w_ref[i]
    o_ref[...] = acc.astype(o_ref.dtype)


def linear_weighted_avg(inputs, weights, out_dtype=None, max_tile_bytes=None):
    """inputs: list of arrays with identical shape; weights: (n_inputs,) scalars.

    out_dtype defaults to the input dtype.
    # TODO(synk): PyTorch type promotion would give f32 output for bf16 inputs
    # (f32 scalar weight * bf16 tensor); pass out_dtype=jnp.float32 for parity.
    """
    n_inputs = len(inputs)
    assert n_inputs >= 1
    x0 = inputs[0]
    orig_shape = x0.shape
    dtype = x0.dtype
    out_dtype = dtype if out_dtype is None else out_dtype
    itemsize = jnp.dtype(dtype).itemsize
    out_itemsize = jnp.dtype(out_dtype).itemsize
    sublane = max(8, 32 // itemsize)          # f32 -> 8, bf16 -> 16, int8/fp8 -> 32
    N = int(np.prod(orig_shape)) if orig_shape else 1

    # ---- generation-aware VMEM budget -------------------------------------
    try:
        vmem_cap = int(pltpu.get_tpu_info().vmem_capacity_bytes)
    except Exception:
        vmem_cap = 64 << 20                   # conservative fallback
    small_vmem = vmem_cap < (96 << 20)        # v7x-like: 64 MiB per TensorCore
    vmem_limit = (vmem_cap * 3) // 4          # 96 MiB on v5e/v6e, 48 MiB on v7x
    db_budget = (vmem_cap * 5) // 8           # 80 MiB / 40 MiB for double buffers
    per_stream = max(1 << 17, db_budget // (2 * (n_inputs + 1)))
    target_tile_bytes = (6 << 20) if small_vmem else (4 << 20)
    if max_tile_bytes is not None:
        target_tile_bytes = max_tile_bytes
    target_tile_bytes = min(target_tile_bytes, per_stream)

    w = jnp.asarray(weights, dtype=jnp.float32).reshape(n_inputs)
    kernel = functools.partial(_weighted_sum_kernel, n_inputs=n_inputs)

    cost = pl.CostEstimate(
        flops=(2 * n_inputs - 1) * N,
        transcendentals=0,
        bytes_accessed=(n_inputs * itemsize + out_itemsize) * N + n_inputs * 4,
    )
    cparams = pltpu.CompilerParams(
        dimension_semantics=("parallel",),    # shards row tiles across v7x's 2 TCs
        vmem_limit_bytes=int(vmem_limit),
    )

    if N % 128 == 0:
        # ---- lane-dense 2-D path (free reshape, no padding) ----------------
        L = 128
        for cand in (1024, 512, 256, 128):
            if N % cand == 0:
                L = cand
                break
        M = N // L
        if M <= sublane:
            tm = M                             # full second-to-last dim: always legal
        else:
            rows = max(sublane,
                       (target_tile_bytes // (L * itemsize)) // sublane * sublane)
            if small_vmem:
                # guarantee >= 2 grid steps so both v7x TensorCores get work
                rows = min(rows, _round_up(-(-M // 2), sublane))
            tm = min(M, rows)
        grid = (pl.cdiv(M, tm),)
        spec = pl.BlockSpec((tm, L), lambda i, w_ref: (i, 0))
        xs = [x.reshape(M, L) for x in inputs]
        out_shape = jax.ShapeDtypeStruct((M, L), out_dtype)
    else:
        # ---- flat 1-D path: Pallas masks the partial tail block ------------
        tile_elems = max(1024, (target_tile_bytes // itemsize) // 1024 * 1024)
        if small_vmem and N > 1024:
            tile_elems = min(tile_elems, _round_up(-(-N // 2), 1024))
        tile = N if N <= tile_elems else tile_elems
        grid = (pl.cdiv(N, tile),)
        spec = pl.BlockSpec((tile,), lambda i, w_ref: (i,))
        xs = [x.reshape(N) for x in inputs]
        out_shape = jax.ShapeDtypeStruct((N,), out_dtype)

    out = pl.pallas_call(
        kernel,
        out_shape=out_shape,
        grid_spec=pltpu.PrefetchScalarGridSpec(
            num_scalar_prefetch=1,            # weights -> SMEM before the grid runs
            grid=grid,
            in_specs=[spec] * n_inputs,
            out_specs=spec,
        ),
        compiler_params=cparams,
        cost_estimate=cost,
    )(w, *xs)

    return out.reshape(orig_shape)


if __name__ == "__main__":
    key = jax.random.PRNGKey(0)
    n_inputs = 3
    k_w, *k_xs = jax.random.split(key, n_inputs + 1)
    # one scalar weight per input (torch.randn(1) analogue, as a flat vector)
    weights = jax.random.normal(k_w, (n_inputs,), dtype=jnp.float32)

    def ref_fn(xs):
        return sum(x * weights[i] for i, x in enumerate(xs))

    # 1) embedding-like shape, element count divisible by 128 (2-D lane-dense path)
    inputs1 = [jax.random.normal(k, (2, 8, 32), dtype=jnp.float32) for k in k_xs]
    out1 = jax.block_until_ready(linear_weighted_avg(inputs1, weights))
    np.testing.assert_allclose(np.asarray(out1), np.asarray(ref_fn(inputs1)),
                               rtol=1e-5, atol=1e-5)

    # 2) element count NOT divisible by 128, small -> single full 1-D block
    k2 = jax.random.split(key, n_inputs)
    inputs2 = [jax.random.normal(k2[i], (2, 7, 48), dtype=jnp.float32)
               for i in range(n_inputs)]
    out2 = jax.block_until_ready(linear_weighted_avg(inputs2, weights))
    np.testing.assert_allclose(np.asarray(out2), np.asarray(ref_fn(inputs2)),
                               rtol=1e-5, atol=1e-5)

    # 3) non-divisible + forced small tiles -> multi-step 1-D grid with masked tail
    k3 = jax.random.split(jax.random.PRNGKey(3), n_inputs)
    inputs3 = [jax.random.normal(k3[i], (4, 33, 100), dtype=jnp.float32)
               for i in range(n_inputs)]
    out3 = jax.block_until_ready(
        linear_weighted_avg(inputs3, weights, max_tile_bytes=16 << 10))
    np.testing.assert_allclose(np.asarray(out3), np.asarray(ref_fn(inputs3)),
                               rtol=1e-5, atol=1e-5)

    # 4) divisible + forced small tiles -> multi-step 2-D grid
    k4 = jax.random.split(jax.random.PRNGKey(4), n_inputs)
    inputs4 = [jax.random.normal(k4[i], (16, 64, 128), dtype=jnp.float32)
               for i in range(n_inputs)]
    out4 = jax.block_until_ready(
        linear_weighted_avg(inputs4, weights, max_tile_bytes=64 << 10))
    np.testing.assert_allclose(np.asarray(out4), np.asarray(ref_fn(inputs4)),
                               rtol=1e-5, atol=1e-5)

    print("KERNEL_OK")
</pallas_src>

<mosaic_0001>
module attributes {stable_mosaic.version = 11 : i64} {
  func.func @_weighted_sum_kernel(%arg0: i32, %arg1: memref<3xf32, #tpu.memory_space<smem>>, %arg2: memref<1x512xf32, #tpu.memory_space<vmem>>, %arg3: memref<1x512xf32, #tpu.memory_space<vmem>>, %arg4: memref<1x512xf32, #tpu.memory_space<vmem>>, %arg5: memref<1x512xf32, #tpu.memory_space<vmem>>) attributes {dimension_semantics = [#tpu.dimension_semantics<parallel>], iteration_bounds = array<i64: 1>, scalar_prefetch = 1 : i64, scratch_operands = 0 : i64, tpu.core_type = #tpu.core_type<tc>, window_params = [{transform_indices = @transform_0, window_bounds = array<i64: 1, 512>}, {transform_indices = @transform_1, window_bounds = array<i64: 1, 512>}, {transform_indices = @transform_2, window_bounds = array<i64: 1, 512>}, {transform_indices = @transform_3, window_bounds = array<i64: 1, 512>}]} {
    %c0 = arith.constant 0 : index
    %c0_0 = arith.constant 0 : index
    %0 = vector.load %arg2[%c0, %c0_0] : memref<1x512xf32, #tpu.memory_space<vmem>>, vector<1x512xf32>
    %c0_1 = arith.constant 0 : index
    %1 = memref.load %arg1[%c0_1] : memref<3xf32, #tpu.memory_space<smem>>
    %2 = vector.broadcast %1 : f32 to vector<1x512xf32>
    %3 = arith.mulf %0, %2 : vector<1x512xf32>
    %c0_2 = arith.constant 0 : index
    %c0_3 = arith.constant 0 : index
    %4 = vector.load %arg3[%c0_2, %c0_3] : memref<1x512xf32, #tpu.memory_space<vmem>>, vector<1x512xf32>
    %c1 = arith.constant 1 : index
    %5 = memref.load %arg1[%c1] : memref<3xf32, #tpu.memory_space<smem>>
    %6 = vector.broadcast %5 : f32 to vector<1x512xf32>
    %7 = arith.mulf %4, %6 : vector<1x512xf32>
    %8 = arith.addf %3, %7 : vector<1x512xf32>
    %c0_4 = arith.constant 0 : index
    %c0_5 = arith.constant 0 : index
    %9 = vector.load %arg4[%c0_4, %c0_5] : memref<1x512xf32, #tpu.memory_space<vmem>>, vector<1x512xf32>
    %c2 = arith.constant 2 : index
    %10 = memref.load %arg1[%c2] : memref<3xf32, #tpu.memory_space<smem>>
    %11 = vector.broadcast %10 : f32 to vector<1x512xf32>
    %12 = arith.mulf %9, %11 : vector<1x512xf32>
    %13 = arith.addf %8, %12 : vector<1x512xf32>
    %c0_6 = arith.constant 0 : index
    %c0_7 = arith.constant 0 : index
    %14 = vector.load %arg5[%c0_6, %c0_7] : memref<1x512xf32, #tpu.memory_space<vmem>>, vector<1x512xf32>
    tpu.vector_store %arg5[%c0_6, %c0_7], %13 {strides = array<i32>} : memref<1x512xf32, #tpu.memory_space<vmem>>, vector<1x512xf32>,
    return
  }
  func.func @transform_0(%arg0: i32, %arg1: memref<3xf32, #tpu.memory_space<smem>>) -> (i32, i32) {
    %c0_i32 = arith.constant 0 : i32
    %c0_i32_0 = arith.constant 0 : i32
    return %arg0, %c0_i32 : i32, i32
  }
  func.func @transform_1(%arg0: i32, %arg1: memref<3xf32, #tpu.memory_space<smem>>) -> (i32, i32) {
    %c0_i32 = arith.constant 0 : i32
    %c0_i32_0 = arith.constant 0 : i32
    return %arg0, %c0_i32 : i32, i32
  }
  func.func @transform_2(%arg0: i32, %arg1: memref<3xf32, #tpu.memory_space<smem>>) -> (i32, i32) {
    %c0_i32 = arith.constant 0 : i32
    %c0_i32_0 = arith.constant 0 : i32
    return %arg0, %c0_i32 : i32, i32
  }
  func.func @transform_3(%arg0: i32, %arg1: memref<3xf32, #tpu.memory_space<smem>>) -> (i32, i32) {
    %c0_i32 = arith.constant 0 : i32
    %c0_i32_0 = arith.constant 0 : i32
    return %arg0, %c0_i32 : i32, i32
  }
}

</mosaic_0001>

<bundles_post_ra>
// kernel: tpu_custom_call.1
= control target key start
LH: loop header
LB: loop body
LE: loop exit
PB: predicated region body
PF: predicated region fallthrough
CT: control target
= control target key end

     0   :  { %s225_s18 = smov [#allocation3]   ;;  %s270_s0 = inlined_call_operand.hbm [shape: f32[3], index: 0, kind: input, shape index: {}]   ;;  %s271_s1 = inlined_call_operand.hbm [shape: f32[1,512], index: 1, kind: input, shape index: {}]   ;;  %s272_s2 = inlined_call_operand.hbm [shape: f32[1,512], index: 2, kind: input, shape index: {}]   ;;  %s273_s3 = inlined_call_operand.hbm [shape: f32[1,512], index: 3, kind: input, shape index: {}]   ;;  %s274_s4 = inlined_call_operand.hbm [shape: f32[1,512], index: 4, kind: output, shape index: {}]  }
   0x1   :  { %s10_s17 = sshll.u32 %s270_s0, 4  ;;  %s11_s17 = int_to_ptr.hbm [resolvable:$true] %s10_s17 }
   0x2   :  { %13 = dma.hbm_to_smem %s11_s17, 16, %s225_s18, [#allocation2] }
   0x3   :  { %217 = dma.done.wait [#allocation2], 16 }
   0x4   :  { %218 = vsyncadd [#allocation2], 4294967280 }
   0x5   :  { %16 = sfence }
   0x6   :  { %17 = vsyncpa [#allocation5], 0 }
   0x7   :  { %18 = vsyncpa [#allocation8], 0  ;;  %s36_s21 = sshll.u32 %s272_s2, 4  ;;  %s37_s21 = int_to_ptr.hbm [resolvable:$true] %s36_s21 }
   0x8   :  { %19 = vsyncpa [#allocation6], 0  ;;  %s226_s22 = smov [#allocation7]   ;;  %s25_s0 = sshll.u32 %s271_s1, 4  ;;  %s26_s0 = int_to_ptr.hbm [resolvable:$true] %s25_s0 }
   0x9   :  { %s38_s23 = sshll.u32 %s226_s22, 4  ;;  %s227_s26 = smov [#allocation4]   ;;  %s39_s23 = int_to_ptr.vmem [resolvable:$true] %s38_s23 }
   0xa   :  { %41 = dma.hbm_to_vmem [thread:$0]  %s37_s21, 64, %s39_s23, [#allocation8]  }
   0xb   :  { %s27_s27 = sshll.u32 %s227_s26, 4  ;;  %s47_s30 = sshll.u32 %s273_s3, 4  ;;  %s28_s27 = int_to_ptr.vmem [resolvable:$true] %s27_s27  ;;  %s48_s30 = int_to_ptr.hbm [resolvable:$true] %s47_s30 }
   0xc   :  { %30 = dma.hbm_to_vmem [thread:$0]  %s26_s0, 64, %s28_s27, [#allocation5]  }
   0xd   :  { %s228_s2 = smov [#allocation9]  }
   0xe   :  { %s49_s5 = sshll.u32 %s228_s2, 4  ;;  %s50_s5 = int_to_ptr.vmem [resolvable:$true] %s49_s5 }
   0xf   :  { %52 = dma.hbm_to_vmem [thread:$0]  %s48_s30, 64, %s50_s5, [#allocation8]  }
  0x10   :  { %219 = dma.done.wait [#allocation5], 64  }
  0x11   :  { %220 = vsyncadd [#allocation5], 4294967232 }
  0x12   :  { %221 = dma.done.wait [#allocation8], 128  }
  0x13   :  { %222 = vsyncadd [#allocation8], 4294967168  ;;  %s66_s1 = sld [smem:[#allocation3]]  ;;  %v65_v0 = vld [vmem:[#allocation4] sm:$0xf]  ;;  %v79_v6 = vlaneseq  ;;  %s229_s3 = smov [#allocation10]  }
  0x14   :  { %s102_s6 = sld [smem:[#allocation3 + $0x1]]  ;;  %v69_v2 = vld [vmem:[#allocation7] sm:$0xf]  ;;  %v74_v3 = vld [vmem:[#allocation9] sm:$0xf]  ;;  %s89_s8 = sshll.u32 %s229_s3, 4  ;;  %s90_s8 = int_to_ptr.vmem [resolvable:$true] %s89_s8 }
  0x15   :  { %s103_s7 = sld [smem:[#allocation3 + $0x2]]  ;;  %s91_s11 = sshll.u32 %s274_s4, 4  ;;  %vm81_vm0 = vcmp.lt.s32.totalorder %v79_v6, 512  ;;  %s92_s11 = int_to_ptr.hbm [resolvable:$true] %s91_s11 }
  0x19   :  { %v67_v1 = vstv %s66_s1 }
  0x1a   :  { %v68_v4 = vmul.f32 %v67_v1, %v65_v0  ;;  %v71_v5 = vstv %s102_s6 }
  0x1b   :  { %v72_v7 = vmul.f32 %v71_v5, %v69_v2  ;;  %v76_v8 = vstv %s103_s7 }
  0x1c   :  { %v77_v9 = vmul.f32 %v76_v8, %v74_v3 }
  0x1d   :  { %v73_v10 = vadd.f32 %v72_v7, %v68_v4 }
  0x1f   :  { %v78_v11 = vadd.f32 %v77_v9, %v73_v10 }
  0x21   :  { %83 = vst.msk [vmem:[#allocation10] sm:$0xf] %vm81_vm0, %v78_v11 }
  0x22   :  { %94 = dma.vmem_to_hbm [thread:$0]  %s90_s8, 64, %s92_s11, [#allocation6]  }
  0x23   :  { %223 = dma.done.wait [#allocation6], 64  }
  0x24   :  { %224 = vsyncadd [#allocation6], 4294967232 }
  0x25   :  { %99 = vsyncpa [#allocation5], 1 }
  0x26   :  { %100 = vsyncpa [#allocation8], 1 }
  0x27   :  { %101 = vsyncpa [#allocation6], 1 }

</bundles_post_ra>
